<compile_context>
chip_gen: v7x
topology: tpu7x:2x2x1
jax: 0.10.0
libtpu: 0.0.40
codegen_flags: <defaults>
</compile_context>

<pallas_src>
import jax
import jax.numpy as jnp
from jax.experimental import pallas as pl
from jax.experimental.pallas import tpu as pltpu


def _round_up(x, m):
    return ((x + m - 1) // m) * m


def _tpu_plan():
    """Per-generation tile / VMEM-limit plan (ridge-point driven)."""
    kind = ""
    try:
        kind = jax.devices()[0].device_kind.lower()
    except Exception:
        pass
    if "v7" in kind:
        # 64 MiB VMEM per TC, ridge ~310 flop/byte, 2 TCs per chip.
        return dict(tm=512, th=512, vmem=52 << 20, cores=2)
    if "v6" in kind or "trillium" in kind:
        # 128 MiB VMEM, ridge ~650 flop/byte -> need tm ~ 1024 to cross it.
        return dict(tm=1024, th=512, vmem=100 << 20, cores=1)
    if "v5 lite" in kind or "v5e" in kind or "v5lite" in kind:
        # Already compute-bound at tm=256; larger tiles only add VMEM pressure.
        return dict(tm=256, th=512, vmem=64 << 20, cores=1)
    # Unknown / older chip: conservative defaults.
    return dict(tm=256, th=512, vmem=64 << 20, cores=1)


def _pick_th(H, target):
    """Largest 128-multiple divisor of H not exceeding target (or full H)."""
    if H <= target:
        return H
    t = target - (target % 128)
    while t >= 128:
        if H % t == 0:
            return t
        t -= 128
    return H  # fall back to full H (no hidden tiling)


def _pick_tm(M, target, min_tiles):
    """Balanced 16-row-granule row tile (minimizes zero-row tail padding)."""
    n_tiles = max(pl.cdiv(M, target), min_tiles)
    tm = _round_up(pl.cdiv(M, n_tiles), 16)
    return min(tm, _round_up(M, 16))


def _mlp_kernel_accum_out(x_ref, w1_ref, w2_ref, o_ref):
    """f32 output path: accumulate directly into the VMEM-resident out block."""
    # Grid: (row tiles i, hidden tiles j); j is the reduction axis (last).
    # x_ref:  (tm, D) f32 row tile (constant over j)    -> cast to bf16 in VPU
    # w1_ref: (D, th) bf16 column slab of c_fc weight (pre-transposed)
    # w2_ref: (th, D) bf16 row slab of c_proj weight (pre-transposed)
    # o_ref:  (tm, D) f32 output tile (same block for all j -> VMEM resident)
    j = pl.program_id(1)

    @pl.when(j == 0)
    def _():
        o_ref[...] = jnp.zeros_like(o_ref)

    xb = x_ref[...].astype(jnp.bfloat16)           # in-kernel cast (VPU slack)
    h = jnp.dot(xb, w1_ref[...], preferred_element_type=jnp.float32)
    h = jnp.maximum(h, 0.0)
    h = h * h                                      # relu(h)^2 in f32
    o_ref[...] += jnp.dot(h.astype(w2_ref.dtype), w2_ref[...],
                          preferred_element_type=jnp.float32)


def _mlp_kernel_scratch_acc(x_ref, w1_ref, w2_ref, o_ref, acc_ref):
    """Non-f32 output path (e.g. bf16): keep an f32 scratch accumulator."""
    j = pl.program_id(1)

    @pl.when(j == 0)
    def _():
        acc_ref[...] = jnp.zeros_like(acc_ref)

    xb = x_ref[...].astype(jnp.bfloat16)
    h = jnp.dot(xb, w1_ref[...], preferred_element_type=jnp.float32)
    h = jnp.maximum(h, 0.0)
    h = h * h
    acc_ref[...] += jnp.dot(h.astype(w2_ref.dtype), w2_ref[...],
                            preferred_element_type=jnp.float32)

    @pl.when(j == pl.num_programs(1) - 1)
    def _():
        o_ref[...] = acc_ref[...].astype(o_ref.dtype)


def mlp_forward(x, w_fc, w_proj, *, out_dtype=None, tm=None, th=None):
    """Fused MLP forward.

    x:      (B, T, D) activations.
    w_fc:   (H, D)  torch nn.Linear layout (out_features, in_features), H = 4*D.
    w_proj: (D, H)  torch layout.
    out_dtype: defaults to x.dtype (f32); pass jnp.bfloat16 if downstream
               accepts it (halves output VMEM/HBM traffic).
    """
    B, T, D = x.shape
    H = w_fc.shape[0]
    assert w_fc.shape == (H, D) and w_proj.shape == (D, H)

    plan = _tpu_plan()
    tm_target = tm if tm is not None else plan["tm"]
    th_target = th if th is not None else plan["th"]
    out_dtype = jnp.dtype(x.dtype if out_dtype is None else out_dtype)

    # One-time weight prep (offline / at load time in a real model):
    # transpose to (in, out) and cast to bf16 so the kernel does plain x @ W.
    w1 = w_fc.T.astype(jnp.bfloat16)      # (D, H)
    w2 = w_proj.T.astype(jnp.bfloat16)    # (H, D)

    M = B * T
    x2d = x.reshape(M, D)                 # NO dtype cast here: cast in-kernel

    # Keep the "parallel" row axis >= 2 tiles on multi-TC chips (v7x) when M
    # allows, so both TensorCores get work.
    min_tiles = 2 if (plan["cores"] >= 2 and M >= 32) else 1
    tm_eff = _pick_tm(M, tm_target, min_tiles)
    Mp = _round_up(M, tm_eff)
    if Mp != M:
        x2d = jnp.pad(x2d, ((0, Mp - M), (0, 0)))

    th_eff = _pick_th(H, th_target)
    assert H % th_eff == 0
    grid = (Mp // tm_eff, H // th_eff)

    f32_out = out_dtype == jnp.float32
    kernel = _mlp_kernel_accum_out if f32_out else _mlp_kernel_scratch_acc
    scratch = [] if f32_out else [pltpu.VMEM((tm_eff, D), jnp.float32)]

    # Advisory cost hint: weights are re-streamed once per row tile.
    n_row_tiles = grid[0]
    flops = 4 * Mp * D * H  # two matmuls, 2*M*D*H each
    bytes_accessed = (Mp * D * x.dtype.itemsize                # read x
                      + n_row_tiles * 2 * (D * H + H * D)      # bf16 W1+W2 per row tile
                      + Mp * D * out_dtype.itemsize)           # write out

    out2d = pl.pallas_call(
        kernel,
        out_shape=jax.ShapeDtypeStruct((Mp, D), out_dtype),
        grid_spec=pltpu.PrefetchScalarGridSpec(
            num_scalar_prefetch=0,
            grid=grid,
            in_specs=[
                pl.BlockSpec((tm_eff, D), lambda i, j: (i, 0)),   # x row tile
                pl.BlockSpec((D, th_eff), lambda i, j: (0, j)),   # W1 hidden slab
                pl.BlockSpec((th_eff, D), lambda i, j: (j, 0)),   # W2 hidden slab
            ],
            out_specs=pl.BlockSpec((tm_eff, D), lambda i, j: (i, 0)),
            scratch_shapes=scratch,
        ),
        compiler_params=pltpu.CompilerParams(
            dimension_semantics=("parallel", "arbitrary"),
            vmem_limit_bytes=plan["vmem"],
        ),
        cost_estimate=pl.CostEstimate(
            flops=flops, transcendentals=0, bytes_accessed=bytes_accessed),
    )(x2d, w1, w2)

    return out2d[:M].reshape(B, T, D)


def mlp_reference(x, w_fc, w_proj):
    h = jnp.einsum("btd,hd->bth", x, w_fc)
    h = jnp.square(jnp.maximum(h, 0.0))
    return jnp.einsum("bth,dh->btd", h, w_proj)


if __name__ == "__main__":
    B, T, n_embd = 2, 8, 32          # hidden = 4 * n_embd = 128
    H = 4 * n_embd

    key = jax.random.PRNGKey(0)
    kx, k1, k2 = jax.random.split(key, 3)
    x = jax.random.normal(kx, (B, T, n_embd), dtype=jnp.float32)
    # torch nn.Linear weight layout: (out_features, in_features)
    w_fc = jax.random.normal(k1, (H, n_embd), dtype=jnp.float32) * 0.02
    # NOTE: the original module zero-inits c_proj.weight (output identically
    # zero); nonzero here so the numerical check is meaningful.
    w_proj = jax.random.normal(k2, (n_embd, H), dtype=jnp.float32) * 0.02

    out = jax.block_until_ready(mlp_forward(x, w_fc, w_proj))

    ref = mlp_reference(x, w_fc, w_proj)
    assert out.shape == (B, T, n_embd)
    assert out.dtype == x.dtype
    # bf16 inputs/weights/intermediate with f32 accumulation -> loosened
    # tolerance vs. the pure-f32 reference.
    assert jnp.allclose(out, ref, atol=2e-4, rtol=5e-2), "mismatch vs reference"

    print("KERNEL_OK")
</pallas_src>

<mosaic_0001>
module attributes {stable_mosaic.version = 11 : i64} {
  func.func @_mlp_kernel_accum_out(%arg0: i32, %arg1: i32, %arg2: memref<16x32xf32, #tpu.memory_space<vmem>>, %arg3: memref<32x128xbf16, #tpu.memory_space<vmem>>, %arg4: memref<128x32xbf16, #tpu.memory_space<vmem>>, %arg5: memref<16x32xf32, #tpu.memory_space<vmem>>) attributes {dimension_semantics = [#tpu.dimension_semantics<parallel>, #tpu.dimension_semantics<arbitrary>], iteration_bounds = array<i64: 1, 1>, scalar_prefetch = 0 : i64, scratch_operands = 0 : i64, tpu.core_type = #tpu.core_type<tc>, window_params = [{transform_indices = @transform_0, window_bounds = array<i64: 16, 32>}, {transform_indices = @transform_1, window_bounds = array<i64: 32, 128>}, {transform_indices = @transform_2, window_bounds = array<i64: 128, 32>}, {transform_indices = @transform_3, window_bounds = array<i64: 16, 32>}]} {
    %c0_i32 = arith.constant 0 : i32
    %0 = arith.cmpi eq, %arg1, %c0_i32 : i32
    %1 = arith.extui %0 : i1 to i32
    %c0_i32_0 = arith.constant 0 : i32
    %2 = arith.cmpi ne, %1, %c0_i32_0 : i32
    scf.if %2 {
      %cst_12 = arith.constant 0.000000e+00 : f32
      %16 = vector.broadcast %cst_12 : f32 to vector<16x32xf32>
      %c0_13 = arith.constant 0 : index
      %c0_14 = arith.constant 0 : index
      %17 = vector.load %arg5[%c0_13, %c0_14] : memref<16x32xf32, #tpu.memory_space<vmem>>, vector<16x32xf32>
      tpu.vector_store %arg5[%c0_13, %c0_14], %16 {strides = array<i32>} : memref<16x32xf32, #tpu.memory_space<vmem>>, vector<16x32xf32>,
    } else {
    }
    %c0 = arith.constant 0 : index
    %c0_1 = arith.constant 0 : index
    %3 = vector.load %arg2[%c0, %c0_1] : memref<16x32xf32, #tpu.memory_space<vmem>>, vector<16x32xf32>
    %4 = arith.truncf %3 : vector<16x32xf32> to vector<16x32xbf16>
    %c0_2 = arith.constant 0 : index
    %c0_3 = arith.constant 0 : index
    %5 = vector.load %arg3[%c0_2, %c0_3] : memref<32x128xbf16, #tpu.memory_space<vmem>>, vector<32x128xbf16>
    %cst = arith.constant dense<0.000000e+00> : vector<16x128xf32>
    %6 = tpu.matmul %4, %5, %cst {dimension_numbers = #tpu.dot_dimension_numbers<[1], [0], [0], [1], [0, 0, 1, 1], [], []>} : vector<16x32xbf16>, vector<32x128xbf16>, vector<16x128xf32> -> vector<16x128xf32>
    %cst_4 = arith.constant 0.000000e+00 : f32
    %7 = vector.broadcast %cst_4 : f32 to vector<16x128xf32>
    %8 = arith.maximumf %6, %7 : vector<16x128xf32>
    %9 = arith.mulf %8, %8 : vector<16x128xf32>
    %c0_5 = arith.constant 0 : index
    %c0_6 = arith.constant 0 : index
    %10 = vector.load %arg5[%c0_5, %c0_6] : memref<16x32xf32, #tpu.memory_space<vmem>>, vector<16x32xf32>
    %11 = arith.truncf %9 : vector<16x128xf32> to vector<16x128xbf16>
    %c0_7 = arith.constant 0 : index
    %c0_8 = arith.constant 0 : index
    %12 = vector.load %arg4[%c0_7, %c0_8] : memref<128x32xbf16, #tpu.memory_space<vmem>>, vector<128x32xbf16>
    %cst_9 = arith.constant dense<0.000000e+00> : vector<16x32xf32>
    %13 = tpu.matmul %11, %12, %cst_9 {dimension_numbers = #tpu.dot_dimension_numbers<[1], [0], [0], [1], [0, 0, 1, 1], [], []>} : vector<16x128xbf16>, vector<128x32xbf16>, vector<16x32xf32> -> vector<16x32xf32>
    %14 = arith.addf %10, %13 : vector<16x32xf32>
    %c0_10 = arith.constant 0 : index
    %c0_11 = arith.constant 0 : index
    %15 = vector.load %arg5[%c0_10, %c0_11] : memref<16x32xf32, #tpu.memory_space<vmem>>, vector<16x32xf32>
    tpu.vector_store %arg5[%c0_10, %c0_11], %14 {strides = array<i32>} : memref<16x32xf32, #tpu.memory_space<vmem>>, vector<16x32xf32>,
    return
  }
  func.func @transform_0(%arg0: i32, %arg1: i32) -> (i32, i32) {
    %c0_i32 = arith.constant 0 : i32
    %c0_i32_0 = arith.constant 0 : i32
    return %arg0, %c0_i32 : i32, i32
  }
  func.func @transform_1(%arg0: i32, %arg1: i32) -> (i32, i32) {
    %c0_i32 = arith.constant 0 : i32
    %c0_i32_0 = arith.constant 0 : i32
    return %c0_i32, %arg1 : i32, i32
  }
  func.func @transform_2(%arg0: i32, %arg1: i32) -> (i32, i32) {
    %c0_i32 = arith.constant 0 : i32
    %c0_i32_0 = arith.constant 0 : i32
    return %arg1, %c0_i32 : i32, i32
  }
  func.func @transform_3(%arg0: i32, %arg1: i32) -> (i32, i32) {
    %c0_i32 = arith.constant 0 : i32
    %c0_i32_0 = arith.constant 0 : i32
    return %arg0, %c0_i32 : i32, i32
  }
}

</mosaic_0001>

<bundles_post_ra>
// kernel: tpu_custom_call.1
= control target key start
LH: loop header
LB: loop body
LE: loop exit
PB: predicated region body
PF: predicated region fallthrough
CT: control target
= control target key end

     0   :  { %8 = vsyncpa [#allocation3], 0  ;;  %s522_s0 = inlined_call_operand.hbm [shape: f32[16,32], index: 0, kind: input, shape index: {}]   ;;  %s523_s1 = inlined_call_operand.hbm [shape: bf16[32,128], index: 1, kind: input, shape index: {}]   ;;  %s524_s2 = inlined_call_operand.hbm [shape: bf16[128,32], index: 2, kind: input, shape index: {}]   ;;  %s525_s3 = inlined_call_operand.hbm [shape: f32[16,32], index: 3, kind: output, shape index: {}]  }
   0x1   :  { %9 = vsyncpa [#allocation6], 0 }
   0x2   :  { %10 = vsyncpa [#allocation4], 0  ;;  %s427_s12 = smov [#allocation5]   ;;  %s333_s16 = scalar_lea.hbm %s523_s1, 256 }
   0x3   :  { %s28_s13 = sshll.u32 %s427_s12, 4  ;;  %p334_p0 = scmp.ne.s32.totalorder %s523_s1, %s333_s16  ;;  %s29_s13 = int_to_ptr.vmem [resolvable:$true] %s28_s13 }
   0x4   :  { %p337_p1 = scmp.lt.u32.totalorder %s333_s16, %s523_s1 }
   0x6   :  { %p339_p2 = pnand %p337_p1, %p334_p0 }
   0x8   :  { %342 = shalt.err (!%p339_p2)
}
   0x9   :  { %s343_s21 = scalar_lea.vmem %s29_s13, 256  ;;  %p348_p4 = scmp.lt.s32.totalorder %s29_s13, %s29_s13 }
   0xa   :  { %p344_p3 = scmp.ne.s32.totalorder %s29_s13, %s343_s21  ;;  %p349_p5 = scmp.lt.s32.totalorder %s343_s21, %s343_s21 }
   0xc   :  { %p350_p6 = por %p349_p5, %p348_p4 }
   0xe   :  { %p351_p7 = pnand %p350_p6, %p344_p3 }
  0x10   :  { %354 = shalt.err (!%p351_p7)
}
  0x11   :  { %s428_s22 = smov 64   ;;  %s429_s23 = smov 4  }
  0x12   :  { %34 = dma.hbm_to_vmem [thread:$0]  %s523_s1, 256, %s29_s13, [#allocation6], %s428_s22, %s428_s22, %s429_s23  }
  0x13   :  { %s430_s26 = smov [#allocation2]   ;;  %s355_s30 = scalar_lea.hbm %s522_s0, 256 }
  0x14   :  { %s16_s27 = sshll.u32 %s430_s26, 4  ;;  %p356_p8 = scmp.ne.s32.totalorder %s522_s0, %s355_s30  ;;  %s17_s27 = int_to_ptr.vmem [resolvable:$true] %s16_s27 }
  0x15   :  { %p359_p9 = scmp.lt.u32.totalorder %s355_s30, %s522_s0 }
  0x17   :  { %p361_p10 = pnand %p359_p9, %p356_p8 }
  0x19   :  { %364 = shalt.err (!%p361_p10)
}
  0x1a   :  { %s365_s8 = scalar_lea.vmem %s17_s27, 256  ;;  %p370_p12 = scmp.lt.s32.totalorder %s17_s27, %s17_s27 }
  0x1b   :  { %p366_p11 = scmp.ne.s32.totalorder %s17_s27, %s365_s8  ;;  %p371_p13 = scmp.lt.s32.totalorder %s365_s8, %s365_s8 }
  0x1d   :  { %p372_p0 = por %p371_p13, %p370_p12 }
  0x1f   :  { %p373_p1 = pnand %p372_p0, %p366_p11 }
  0x21   :  { %376 = shalt.err (!%p373_p1)
}
  0x22   :  { %s431_s1 = smov 128   ;;  %s432_s9 = smov 8  }
  0x23   :  { %22 = dma.hbm_to_vmem [thread:$0]  %s522_s0, 256, %s17_s27, [#allocation3], %s431_s1, %s431_s1, %s432_s9  }
  0x24   :  { %s433_s12 = smov [#allocation7]   ;;  %s377_s16 = scalar_lea.hbm %s524_s2, 1024 }
  0x25   :  { %s40_s13 = sshll.u32 %s433_s12, 4  ;;  %p378_p2 = scmp.ne.s32.totalorder %s524_s2, %s377_s16  ;;  %s41_s13 = int_to_ptr.vmem [resolvable:$true] %s40_s13 }
  0x26   :  { %p381_p3 = scmp.lt.u32.totalorder %s377_s16, %s524_s2 }
  0x28   :  { %p383_p4 = pnand %p381_p3, %p378_p2 }
  0x2a   :  { %386 = shalt.err (!%p383_p4)
}
  0x2b   :  { %s387_s21 = scalar_lea.vmem %s41_s13, 1024  ;;  %p392_p6 = scmp.lt.s32.totalorder %s41_s13, %s41_s13 }
  0x2c   :  { %p388_p5 = scmp.ne.s32.totalorder %s41_s13, %s387_s21  ;;  %p393_p7 = scmp.lt.s32.totalorder %s387_s21, %s387_s21 }
  0x2e   :  { %p394_p8 = por %p393_p7, %p392_p6 }
  0x30   :  { %p395_p9 = pnand %p394_p8, %p388_p5 }
  0x32   :  { %398 = shalt.err (!%p395_p9)
}
  0x33   :  { %46 = dma.hbm_to_vmem [thread:$0]  %s524_s2, 1024, %s41_s13, [#allocation6], %s428_s22, %s428_s22, %s429_s23  }
  0x34   :  { %421 = dma.done.wait [#allocation3], 256  }
  0x35   :  { %422 = vsyncadd [#allocation3], 4294967040 }
  0x36   :  { %423 = dma.done.wait [#allocation6], 1280  }
  0x37   :  { %424 = vsyncadd [#allocation6], 4294966016  ;;  %vm61_vm0 = vcmask 261120   ;;  %v434_v0 = vmov 0.0   ;;  %vm435_vm1 = vmmov 0   ;;  %v323_v1 = vld [vmem:[#allocation5] sm:$0xff]  }
  0x38   :  { %285 = vmatprep.subr.bf16.mxu0 %v434_v0  ;;  %289 = vmatprep.mubr.msk.bf16.mxu0 %vm435_vm1, %v434_v0  ;;  %62 = vst.msk [vmem:[#allocation8] sm:$0xff] %vm61_vm0, %v434_v0  ;;  %63 = vst.msk [vmem:[#allocation8 + $0x8] sm:$0xff] %vm61_vm0, %v434_v0  ;;  %v324_v2 = vld [vmem:[#allocation5 + $0x8] sm:$0xff]   ;;  %v64_v3 = vld [vmem:[#allocation2] sm:$0xff]  ;;  %s436_s2 = smov [#allocation8]  }
  0x39   :  { %293 = vmatprep.subr.bf16.mxu1 %v434_v0  ;;  %309 = vmatprep.mubr.msk.bf16.mxu1 %vm435_vm1, %v434_v0  ;;  %v65_v4 = vld [vmem:[#allocation2 + $0x8] sm:$0xff]  ;;  %v325_v5 = vld [vmem:[#allocation7] sm:$0xff]   ;;  %v327_v8 = vld [vmem:[#allocation7 + $0x10] sm:$0xff]   ;;  %s249_s22 = sshll.u32 %s436_s2, 4  ;;  %s250_s22 = int_to_ptr.vmem [resolvable:$true] %s249_s22 }
  0x3a   :  { %286 = vmatpush3.bf16.msra.mxu0 %v323_v1  ;;  %v66_v6 = vpack.c.bf16 %v65_v4, %v64_v3  ;;  %294 = vmatpush3.bf16.msra.mxu1 %v325_v5  ;;  %v326_v7 = vld [vmem:[#allocation7 + $0x8] sm:$0xff]   ;;  %v328_v9 = vld [vmem:[#allocation7 + $0x18] sm:$0xff]   ;;  %v329_v10 = vld [vmem:[#allocation7 + $0x20] sm:$0xff]   ;;  %s399_s23 = scalar_lea.vmem %s250_s22, 256  ;;  %p404_p11 = scmp.lt.s32.totalorder %s250_s22, %s250_s22 }
  0x3b   :  { %287 = vmatprep.subr.bf16.mxu0 %v434_v0  ;;  %295 = vmatprep.subr.bf16.mxu1 %v434_v0  ;;  %v330_v11 = vld [vmem:[#allocation7 + $0x28] sm:$0xff]   ;;  %v331_v12 = vld [vmem:[#allocation7 + $0x30] sm:$0xff]   ;;  %v332_v13 = vld [vmem:[#allocation7 + $0x38] sm:$0xff]   ;;  %p400_p10 = scmp.ne.s32.totalorder %s250_s22, %s399_s23  ;;  %p405_p12 = scmp.lt.s32.totalorder %s399_s23, %s399_s23 }
  0x3d   :  { %p406_p13 = por %p405_p12, %p404_p11 }
  0x3e   :  { %288 = vmatpush3.bf16.msra.mxu0 %v324_v2  ;;  %296 = vmatpush3.bf16.msra.mxu1 %v326_v7 }
  0x3f   :  { %297 = vmatprep.subr.bf16.mxu1 %v434_v0  ;;  %v132_v23 = vld [vmem:[#allocation8] sm:$0xff]  ;;  %v133_v25 = vld [vmem:[#allocation8 + $0x8] sm:$0xff]  ;;  %p407_p0 = pnand %p406_p13, %p400_p10 }
  0x41   :  { %290 = vmatmul.mubr.msk.bf16.vlgmr.msra.gmra.mrb[0].mxu0 %vm61_vm0, %v66_v6 }
  0x42   :  { %298 = vmatpush3.bf16.msra.mxu1 %v327_v8 }
  0x43   :  { %299 = vmatprep.subr.bf16.mxu1 %v434_v0 }
  0x46   :  { %300 = vmatpush3.bf16.msra.mxu1 %v328_v9 }
  0x47   :  { %301 = vmatprep.subr.bf16.mxu1 %v434_v0 }
  0x4a   :  { %302 = vmatpush3.bf16.msra.mxu1 %v329_v10 }
  0x4b   :  { %303 = vmatprep.subr.bf16.mxu1 %v434_v0 }
  0x4e   :  { %304 = vmatpush3.bf16.msra.mxu1 %v330_v11 }
  0x4f   :  { %305 = vmatprep.subr.bf16.mxu1 %v434_v0 }
  0x52   :  { %306 = vmatpush3.bf16.msra.mxu1 %v331_v12 }
  0x53   :  { %307 = vmatprep.subr.bf16.mxu1 %v434_v0 }
  0x56   :  { %308 = vmatpush3.bf16.msra.mxu1 %v332_v13 }
 0x114   :  { %v121_v14 = vpop.f32.mrb[0].mxu0 }
 0x115   :  { %v128_v15 = vmax.f32 %v121_v14, 0.0  ;;  %v291_v16 = vpop.f32.mrb[1].mxu0 }
 0x116   :  { %v124_v17 = vpop.f32.mrb[2].mxu0 }
 0x117   :  { %v129_v18 = vmax.f32 %v124_v17, 0.0  ;;  %v292_v19 = vpop.f32.mrb[3].mxu0  ;;  %v130_v20 = vmul.f32 %v128_v15, %v128_v15 }
 0x119   :  { %v131_v21 = vmul.f32 %v129_v18, %v129_v18 }
 0x11b   :  { %v134_v22 = vpack.c.bf16 %v131_v21, %v130_v20 }
 0x11d   :  { %310 = vmatmul.mubr.bf16.vlgmr.msra.gmra.mrb[0].mxu1 %v134_v22 }
 0x1f0   :  { %v233_v24 = vpop.f32.mrb[0].mxu1 }
 0x1f1   :  { %v240_v26 = vadd.f32 %v233_v24, %v132_v23  ;;  %v311_v27 = vpop.f32.mrb[1].mxu1 }
 0x1f2   :  { %v236_v28 = vpop.f32.mrb[2].mxu1 }
 0x1f3   :  { %242 = vst.msk [vmem:[#allocation8] sm:$0xff] %vm61_vm0, %v240_v26  ;;  %v241_v29 = vadd.f32 %v236_v28, %v133_v25  ;;  %v312_v30 = vpop.f32.mrb[3].mxu1 }
 0x1f5   :  { %243 = vst.msk [vmem:[#allocation8 + $0x8] sm:$0xff] %vm61_vm0, %v241_v29 }
 0x1f6   :  { %410 = shalt.err (!%p407_p0)
}
 0x1f7   :  { %s411_s27 = scalar_lea.hbm %s525_s3, 256 }
 0x1f8   :  { %p412_p1 = scmp.ne.s32.totalorder %s525_s3, %s411_s27  ;;  %p415_p2 = scmp.lt.u32.totalorder %s411_s27, %s525_s3 }
 0x1fa   :  { %p417_p3 = pnand %p415_p2, %p412_p1 }
 0x1fc   :  { %420 = shalt.err (!%p417_p3)
}
 0x1fd   :  { %255 = dma.vmem_to_hbm [thread:$0]  %s250_s22, 256, %s525_s3, [#allocation4], %s431_s1, %s431_s1, %s432_s9  }
 0x1fe   :  { %425 = dma.done.wait [#allocation4], 256  }
 0x1ff   :  { %426 = vsyncadd [#allocation4], 4294967040 }
 0x200   :  { %259 = vsyncpa [#allocation3], 1 }
 0x201   :  { %260 = vsyncpa [#allocation6], 1 }
 0x202   :  { %261 = vsyncpa [#allocation4], 1 }

</bundles_post_ra>
